<compile_context>
chip_gen: v7x
topology: tpu7x:2x2x1
jax: 0.10.0
libtpu: 0.0.40
codegen_flags: <defaults>
</compile_context>

<pallas_src>
import functools
import math

import jax
import jax.numpy as jnp
from jax.experimental import pallas as pl
from jax.experimental.pallas import tpu as pltpu

# ---- small, module-consistent hyperparameters ----
B = 2          # batch
T = 16         # input time steps
IDIM = 80      # input feature dim (idim)
ODIM = 32      # output dim (odim)
KSIZE = 3      # Conv1d kernel size (fixed by the module)
IPAD = 128     # lane-padded idim
OPAD = 128     # lane-padded odim
T1 = T - 2                     # after conv1 (k=3, s=1)
T2 = (T1 - KSIZE) // 2 + 1     # after conv2 (k=3, s=2)


def _subsample_kernel(x_ref, w1_ref, b1_ref, w2_ref, b2_ref, wl_ref, bl_ref, pe_ref,
                      o_ref, h1_ref, *, nt1, nt2):
    """One batch element: conv1(k3,s1)+ReLU -> conv2(k3,s2)+ReLU -> linear -> +pe.

    All operands are 128-lane padded; convs are 3 accumulated per-tap dots in f32.
    """
    # ---- conv1: 3 accumulated K=IPAD dots (per-tap), summed in f32 ----
    acc = jnp.dot(x_ref[0:nt1, :], w1_ref[0], preferred_element_type=jnp.float32)
    acc = acc + jnp.dot(x_ref[1:nt1 + 1, :], w1_ref[1], preferred_element_type=jnp.float32)
    acc = acc + jnp.dot(x_ref[2:nt1 + 2, :], w1_ref[2], preferred_element_type=jnp.float32)
    h1_ref[...] = jnp.maximum(acc + b1_ref[...], 0.0)            # (nt1, OPAD) f32 scratch

    # ---- conv2 (stride 2): strided sublane reads from the scratch, 3 accumulated dots ----
    t0 = h1_ref[pl.ds(0, nt2, stride=2), :].astype(jnp.bfloat16)
    t1 = h1_ref[pl.ds(1, nt2, stride=2), :].astype(jnp.bfloat16)
    t2 = h1_ref[pl.ds(2, nt2, stride=2), :].astype(jnp.bfloat16)
    acc2 = jnp.dot(t0, w2_ref[0], preferred_element_type=jnp.float32)
    acc2 = acc2 + jnp.dot(t1, w2_ref[1], preferred_element_type=jnp.float32)
    acc2 = acc2 + jnp.dot(t2, w2_ref[2], preferred_element_type=jnp.float32)
    h2 = jnp.maximum(acc2 + b2_ref[...], 0.0)                    # (nt2, OPAD) f32

    # ---- linear (sqrt(odim) pre-folded into wl / bl) + positional encoding ----
    y = jnp.dot(h2.astype(jnp.bfloat16), wl_ref[...],
                preferred_element_type=jnp.float32) + bl_ref[...]
    o_ref[...] = y + pe_ref[...]                                 # lane-dense (nt2, OPAD) store


def _positional_encoding(length, d):
    """espnet PositionalEncoding buffer pe[:length, :d] (sin on even, cos on odd columns)."""
    pos = jnp.arange(length, dtype=jnp.float32)[:, None]
    div = jnp.exp(jnp.arange(0, d, 2, dtype=jnp.float32) * (-math.log(10000.0) / d))
    ang = pos * div
    return jnp.stack([jnp.sin(ang), jnp.cos(ang)], axis=-1).reshape(length, d)


def prepare_params(params, nt):
    """One-time (per shape) prep: transpose, lane-pad to 128, fold PE scale, cast to bf16."""
    idim = params["w1"].shape[1]
    odim = params["b1"].shape[0]
    nt2 = ((nt - 2) - KSIZE) // 2 + 1
    xscale = math.sqrt(odim)

    def pad2(m, rows, cols):
        return jnp.pad(m, ((0, rows - m.shape[0]), (0, cols - m.shape[1])))

    # torch Conv1d weight (odim, in, k) -> per-tap (in, odim), zero-padded to (128, 128).
    w1 = jnp.stack([pad2(params["w1"][:, :, k].T, IPAD, OPAD) for k in range(KSIZE)])
    w2 = jnp.stack([pad2(params["w2"][:, :, k].T, OPAD, OPAD) for k in range(KSIZE)])
    # Linear: y = h @ W.T + b ; fold the PositionalEncoding scale sqrt(odim) in here.
    wl = pad2(params["wl"].T * xscale, OPAD, OPAD)
    b1 = jnp.pad(params["b1"], (0, OPAD - odim)).reshape(1, OPAD)
    b2 = jnp.pad(params["b2"], (0, OPAD - odim)).reshape(1, OPAD)
    bl = jnp.pad(params["bl"] * xscale, (0, OPAD - odim)).reshape(1, OPAD)
    pe = jnp.pad(_positional_encoding(nt2, odim), ((0, 0), (0, OPAD - odim)))
    return dict(w1=w1.astype(jnp.bfloat16), w2=w2.astype(jnp.bfloat16),
                wl=wl.astype(jnp.bfloat16), b1=b1, b2=b2, bl=bl, pe=pe)


@jax.jit
def conv1d_subsampling2_forward(x, x_mask, prep):
    """Mirror of Conv1dSubsampling2.forward; x: (B, T, idim), x_mask: (B, 1, T)."""
    nb, nt, idim = x.shape
    nt1 = nt - 2
    nt2 = (nt1 - KSIZE) // 2 + 1

    # One cheap pad + cast in the hot path; everything else was prepared once.
    xp = jnp.pad(x, ((0, 0), (0, 0), (0, IPAD - idim))).astype(jnp.bfloat16)

    kernel = functools.partial(_subsample_kernel, nt1=nt1, nt2=nt2)
    flops = 2 * nb * (nt1 * KSIZE * IPAD * OPAD + nt2 * KSIZE * OPAD * OPAD + nt2 * OPAD * OPAD)
    bytes_accessed = (xp.size * 2
                      + (prep["w1"].size + prep["w2"].size + prep["wl"].size) * 2
                      + (prep["b1"].size + prep["b2"].size + prep["bl"].size + prep["pe"].size) * 4
                      + nb * nt2 * OPAD * 4)

    out = pl.pallas_call(
        kernel,
        out_shape=jax.ShapeDtypeStruct((nb, nt2, OPAD), jnp.float32),
        grid=(nb,),
        in_specs=[
            pl.BlockSpec((None, nt, IPAD), lambda b: (b, 0, 0)),        # x  (per-batch block)
            pl.BlockSpec((KSIZE, IPAD, OPAD), lambda b: (0, 0, 0)),     # w1 (resident)
            pl.BlockSpec((1, OPAD), lambda b: (0, 0)),                  # b1
            pl.BlockSpec((KSIZE, OPAD, OPAD), lambda b: (0, 0, 0)),     # w2
            pl.BlockSpec((1, OPAD), lambda b: (0, 0)),                  # b2
            pl.BlockSpec((OPAD, OPAD), lambda b: (0, 0)),               # wl
            pl.BlockSpec((1, OPAD), lambda b: (0, 0)),                  # bl
            pl.BlockSpec((nt2, OPAD), lambda b: (0, 0)),                # pe (shared)
        ],
        out_specs=pl.BlockSpec((None, nt2, OPAD), lambda b: (b, 0, 0)),
        scratch_shapes=[pltpu.VMEM((nt1, OPAD), jnp.float32)],          # conv1 output
        compiler_params=pltpu.CompilerParams(dimension_semantics=("parallel",)),
        cost_estimate=pl.CostEstimate(flops=flops, transcendentals=0,
                                      bytes_accessed=bytes_accessed),
    )(xp, prep["w1"], prep["b1"], prep["w2"], prep["b2"], prep["wl"], prep["bl"], prep["pe"])

    y = out[:, :, :ODIM]                                                # drop lane padding
    new_mask = None if x_mask is None else x_mask[:, :, :-2][:, :, :-2:2]
    return y, new_mask


def reference_forward(x, x_mask, params, mixed_precision=False):
    """Pure-JAX mirror of the PyTorch module. mixed_precision=True replays the kernel's
    bf16 operand rounding (so only f32 accumulation order differs from the Pallas kernel)."""
    hi = jax.lax.Precision.HIGHEST
    q = (lambda a: a.astype(jnp.bfloat16).astype(jnp.float32)) if mixed_precision else (lambda a: a)
    odim = params["b1"].shape[0]
    xscale = math.sqrt(odim)

    def conv1d(h, w, b, stride):
        k = w.shape[-1]
        tout = (h.shape[1] - k) // stride + 1
        cols = jnp.stack(
            [h[:, i:i + stride * (tout - 1) + 1:stride, :] for i in range(k)], axis=2)
        return jnp.einsum("btkc,ock->bto", q(cols), q(w), precision=hi) + b

    h = jax.nn.relu(conv1d(x, params["w1"], params["b1"], 1))
    h = jax.nn.relu(conv1d(h, params["w2"], params["b2"], 2))
    y = jnp.einsum("btc,co->bto", q(h), q(params["wl"].T * xscale), precision=hi) \
        + params["bl"] * xscale
    y = y + _positional_encoding(y.shape[1], odim)[None]
    new_mask = None if x_mask is None else x_mask[:, :, :-2][:, :, :-2:2]
    return y, new_mask


def init_params(key):
    ks = jax.random.split(key, 6)
    return dict(
        w1=(1.0 / math.sqrt(KSIZE * IDIM)) * jax.random.normal(ks[0], (ODIM, IDIM, KSIZE), jnp.float32),
        b1=0.1 * jax.random.normal(ks[1], (ODIM,), jnp.float32),
        w2=(1.0 / math.sqrt(KSIZE * ODIM)) * jax.random.normal(ks[2], (ODIM, ODIM, KSIZE), jnp.float32),
        b2=0.1 * jax.random.normal(ks[3], (ODIM,), jnp.float32),
        wl=(1.0 / math.sqrt(ODIM)) * jax.random.normal(ks[4], (ODIM, ODIM), jnp.float32),
        bl=0.1 * jax.random.normal(ks[5], (ODIM,), jnp.float32),
    )


if __name__ == "__main__":
    key = jax.random.PRNGKey(0)
    pkey, xkey = jax.random.split(key)
    params = init_params(pkey)
    prep = prepare_params(params, T)           # one-time weight/pe prep, outside the hot path
    x = jax.random.normal(xkey, (B, T, IDIM), jnp.float32)
    x_mask = jnp.ones((B, 1, T), dtype=jnp.bool_)

    y, mask = conv1d_subsampling2_forward(x, x_mask, prep)
    y = jax.block_until_ready(y)

    # Tight structural check: reference replays the kernel's bf16 operand rounding exactly.
    y_mix, mask_ref = reference_forward(x, x_mask, params, mixed_precision=True)
    # Loose end-to-end sanity check against the pure-f32 module math (bf16 tradeoff documented).
    y_f32, _ = reference_forward(x, x_mask, params, mixed_precision=False)

    assert y.shape == (B, T2, ODIM), y.shape
    assert mask.shape == (B, 1, T2), mask.shape
    assert bool(jnp.all(jnp.isfinite(y)))
    assert bool(jnp.all(mask == mask_ref))
    assert bool(jnp.allclose(y, y_mix, atol=2e-3, rtol=2e-3)), \
        float(jnp.max(jnp.abs(y - y_mix)))
    assert bool(jnp.allclose(y, y_f32, atol=2.5e-1, rtol=5e-2)), \
        float(jnp.max(jnp.abs(y - y_f32)))
    print("KERNEL_OK")
</pallas_src>

<mosaic_0001>
module attributes {stable_mosaic.version = 11 : i64} {
  func.func @_subsample_kernel(%arg0: i32, %arg1: memref<1x16x128xbf16, #tpu.memory_space<vmem>>, %arg2: memref<3x128x128xbf16, #tpu.memory_space<vmem>>, %arg3: memref<1x128xf32, #tpu.memory_space<vmem>>, %arg4: memref<3x128x128xbf16, #tpu.memory_space<vmem>>, %arg5: memref<1x128xf32, #tpu.memory_space<vmem>>, %arg6: memref<128x128xbf16, #tpu.memory_space<vmem>>, %arg7: memref<1x128xf32, #tpu.memory_space<vmem>>, %arg8: memref<6x128xf32, #tpu.memory_space<vmem>>, %arg9: memref<1x6x128xf32, #tpu.memory_space<vmem>>, %arg10: memref<14x128xf32, #tpu.memory_space<vmem>>) attributes {dimension_semantics = [#tpu.dimension_semantics<parallel>], iteration_bounds = array<i64: 2>, scalar_prefetch = 0 : i64, scratch_operands = 1 : i64, tpu.core_type = #tpu.core_type<tc>, window_params = [{transform_indices = @transform_0, window_bounds = array<i64: 1, 16, 128>}, {pipeline_mode = #tpu.pipeline_mode<synchronous>, transform_indices = @transform_1, window_bounds = array<i64: 3, 128, 128>}, {pipeline_mode = #tpu.pipeline_mode<synchronous>, transform_indices = @transform_2, window_bounds = array<i64: 1, 128>}, {pipeline_mode = #tpu.pipeline_mode<synchronous>, transform_indices = @transform_3, window_bounds = array<i64: 3, 128, 128>}, {pipeline_mode = #tpu.pipeline_mode<synchronous>, transform_indices = @transform_4, window_bounds = array<i64: 1, 128>}, {pipeline_mode = #tpu.pipeline_mode<synchronous>, transform_indices = @transform_5, window_bounds = array<i64: 128, 128>}, {pipeline_mode = #tpu.pipeline_mode<synchronous>, transform_indices = @transform_6, window_bounds = array<i64: 1, 128>}, {pipeline_mode = #tpu.pipeline_mode<synchronous>, transform_indices = @transform_7, window_bounds = array<i64: 6, 128>}, {transform_indices = @transform_8, window_bounds = array<i64: 1, 6, 128>}]} {
    %c0 = arith.constant 0 : index
    %c0_0 = arith.constant 0 : index
    %c0_1 = arith.constant 0 : index
    %0 = vector.load %arg1[%c0, %c0_0, %c0_1] : memref<1x16x128xbf16, #tpu.memory_space<vmem>>, vector<1x14x128xbf16>
    %1 = vector.shape_cast %0 : vector<1x14x128xbf16> to vector<14x128xbf16>
    %c0_2 = arith.constant 0 : index
    %c0_3 = arith.constant 0 : index
    %c0_4 = arith.constant 0 : index
    %2 = vector.load %arg2[%c0_2, %c0_3, %c0_4] : memref<3x128x128xbf16, #tpu.memory_space<vmem>>, vector<1x128x128xbf16>
    %3 = vector.shape_cast %2 : vector<1x128x128xbf16> to vector<128x128xbf16>
    %cst = arith.constant dense<0.000000e+00> : vector<14x128xf32>
    %4 = tpu.matmul %1, %3, %cst {dimension_numbers = #tpu.dot_dimension_numbers<[1], [0], [0], [1], [0, 0, 1, 1], [], []>} : vector<14x128xbf16>, vector<128x128xbf16>, vector<14x128xf32> -> vector<14x128xf32>
    %c0_5 = arith.constant 0 : index
    %c1 = arith.constant 1 : index
    %c0_6 = arith.constant 0 : index
    %5 = vector.load %arg1[%c0_5, %c1, %c0_6] : memref<1x16x128xbf16, #tpu.memory_space<vmem>>, vector<1x14x128xbf16>
    %6 = vector.shape_cast %5 : vector<1x14x128xbf16> to vector<14x128xbf16>
    %c1_7 = arith.constant 1 : index
    %c0_8 = arith.constant 0 : index
    %c0_9 = arith.constant 0 : index
    %7 = vector.load %arg2[%c1_7, %c0_8, %c0_9] : memref<3x128x128xbf16, #tpu.memory_space<vmem>>, vector<1x128x128xbf16>
    %8 = vector.shape_cast %7 : vector<1x128x128xbf16> to vector<128x128xbf16>
    %cst_10 = arith.constant dense<0.000000e+00> : vector<14x128xf32>
    %9 = tpu.matmul %6, %8, %cst_10 {dimension_numbers = #tpu.dot_dimension_numbers<[1], [0], [0], [1], [0, 0, 1, 1], [], []>} : vector<14x128xbf16>, vector<128x128xbf16>, vector<14x128xf32> -> vector<14x128xf32>
    %10 = arith.addf %4, %9 : vector<14x128xf32>
    %c0_11 = arith.constant 0 : index
    %c2 = arith.constant 2 : index
    %c0_12 = arith.constant 0 : index
    %11 = vector.load %arg1[%c0_11, %c2, %c0_12] : memref<1x16x128xbf16, #tpu.memory_space<vmem>>, vector<1x14x128xbf16>
    %12 = vector.shape_cast %11 : vector<1x14x128xbf16> to vector<14x128xbf16>
    %c2_13 = arith.constant 2 : index
    %c0_14 = arith.constant 0 : index
    %c0_15 = arith.constant 0 : index
    %13 = vector.load %arg2[%c2_13, %c0_14, %c0_15] : memref<3x128x128xbf16, #tpu.memory_space<vmem>>, vector<1x128x128xbf16>
    %14 = vector.shape_cast %13 : vector<1x128x128xbf16> to vector<128x128xbf16>
    %cst_16 = arith.constant dense<0.000000e+00> : vector<14x128xf32>
    %15 = tpu.matmul %12, %14, %cst_16 {dimension_numbers = #tpu.dot_dimension_numbers<[1], [0], [0], [1], [0, 0, 1, 1], [], []>} : vector<14x128xbf16>, vector<128x128xbf16>, vector<14x128xf32> -> vector<14x128xf32>
    %16 = arith.addf %10, %15 : vector<14x128xf32>
    %c0_17 = arith.constant 0 : index
    %c0_18 = arith.constant 0 : index
    %17 = vector.load %arg3[%c0_17, %c0_18] : memref<1x128xf32, #tpu.memory_space<vmem>>, vector<1x128xf32>
    %18 = vector.broadcast %17 : vector<1x128xf32> to vector<14x128xf32>
    %19 = arith.addf %16, %18 : vector<14x128xf32>
    %cst_19 = arith.constant 0.000000e+00 : f32
    %20 = vector.broadcast %cst_19 : f32 to vector<14x128xf32>
    %21 = arith.maximumf %19, %20 : vector<14x128xf32>
    %c0_20 = arith.constant 0 : index
    %c0_21 = arith.constant 0 : index
    %22 = vector.load %arg10[%c0_20, %c0_21] : memref<14x128xf32, #tpu.memory_space<vmem>>, vector<14x128xf32>
    tpu.vector_store %arg10[%c0_20, %c0_21], %21 {strides = array<i32>} : memref<14x128xf32, #tpu.memory_space<vmem>>, vector<14x128xf32>,
    %c0_22 = arith.constant 0 : index
    %c0_23 = arith.constant 0 : index
    %23 = tpu.strided_load %arg10[%c0_22, %c0_23] {strides = array<i32: 2, 1>} : memref<14x128xf32, #tpu.memory_space<vmem>>, vector<6x128xf32>
    %24 = arith.truncf %23 : vector<6x128xf32> to vector<6x128xbf16>
    %c1_24 = arith.constant 1 : index
    %c0_25 = arith.constant 0 : index
    %25 = tpu.strided_load %arg10[%c1_24, %c0_25] {strides = array<i32: 2, 1>} : memref<14x128xf32, #tpu.memory_space<vmem>>, vector<6x128xf32>
    %26 = arith.truncf %25 : vector<6x128xf32> to vector<6x128xbf16>
    %c2_26 = arith.constant 2 : index
    %c0_27 = arith.constant 0 : index
    %27 = tpu.strided_load %arg10[%c2_26, %c0_27] {strides = array<i32: 2, 1>} : memref<14x128xf32, #tpu.memory_space<vmem>>, vector<6x128xf32>
    %28 = arith.truncf %27 : vector<6x128xf32> to vector<6x128xbf16>
    %c0_28 = arith.constant 0 : index
    %c0_29 = arith.constant 0 : index
    %c0_30 = arith.constant 0 : index
    %29 = vector.load %arg4[%c0_28, %c0_29, %c0_30] : memref<3x128x128xbf16, #tpu.memory_space<vmem>>, vector<1x128x128xbf16>
    %30 = vector.shape_cast %29 : vector<1x128x128xbf16> to vector<128x128xbf16>
    %cst_31 = arith.constant dense<0.000000e+00> : vector<6x128xf32>
    %31 = tpu.matmul %24, %30, %cst_31 {dimension_numbers = #tpu.dot_dimension_numbers<[1], [0], [0], [1], [0, 0, 1, 1], [], []>} : vector<6x128xbf16>, vector<128x128xbf16>, vector<6x128xf32> -> vector<6x128xf32>
    %c1_32 = arith.constant 1 : index
    %c0_33 = arith.constant 0 : index
    %c0_34 = arith.constant 0 : index
    %32 = vector.load %arg4[%c1_32, %c0_33, %c0_34] : memref<3x128x128xbf16, #tpu.memory_space<vmem>>, vector<1x128x128xbf16>
    %33 = vector.shape_cast %32 : vector<1x128x128xbf16> to vector<128x128xbf16>
    %cst_35 = arith.constant dense<0.000000e+00> : vector<6x128xf32>
    %34 = tpu.matmul %26, %33, %cst_35 {dimension_numbers = #tpu.dot_dimension_numbers<[1], [0], [0], [1], [0, 0, 1, 1], [], []>} : vector<6x128xbf16>, vector<128x128xbf16>, vector<6x128xf32> -> vector<6x128xf32>
    %35 = arith.addf %31, %34 : vector<6x128xf32>
    %c2_36 = arith.constant 2 : index
    %c0_37 = arith.constant 0 : index
    %c0_38 = arith.constant 0 : index
    %36 = vector.load %arg4[%c2_36, %c0_37, %c0_38] : memref<3x128x128xbf16, #tpu.memory_space<vmem>>, vector<1x128x128xbf16>
    %37 = vector.shape_cast %36 : vector<1x128x128xbf16> to vector<128x128xbf16>
    %cst_39 = arith.constant dense<0.000000e+00> : vector<6x128xf32>
    %38 = tpu.matmul %28, %37, %cst_39 {dimension_numbers = #tpu.dot_dimension_numbers<[1], [0], [0], [1], [0, 0, 1, 1], [], []>} : vector<6x128xbf16>, vector<128x128xbf16>, vector<6x128xf32> -> vector<6x128xf32>
    %39 = arith.addf %35, %38 : vector<6x128xf32>
    %c0_40 = arith.constant 0 : index
    %c0_41 = arith.constant 0 : index
    %40 = vector.load %arg5[%c0_40, %c0_41] : memref<1x128xf32, #tpu.memory_space<vmem>>, vector<1x128xf32>
    %41 = vector.broadcast %40 : vector<1x128xf32> to vector<6x128xf32>
    %42 = arith.addf %39, %41 : vector<6x128xf32>
    %cst_42 = arith.constant 0.000000e+00 : f32
    %43 = vector.broadcast %cst_42 : f32 to vector<6x128xf32>
    %44 = arith.maximumf %42, %43 : vector<6x128xf32>
    %45 = arith.truncf %44 : vector<6x128xf32> to vector<6x128xbf16>
    %c0_43 = arith.constant 0 : index
    %c0_44 = arith.constant 0 : index
    %46 = vector.load %arg6[%c0_43, %c0_44] : memref<128x128xbf16, #tpu.memory_space<vmem>>, vector<128x128xbf16>
    %cst_45 = arith.constant dense<0.000000e+00> : vector<6x128xf32>
    %47 = tpu.matmul %45, %46, %cst_45 {dimension_numbers = #tpu.dot_dimension_numbers<[1], [0], [0], [1], [0, 0, 1, 1], [], []>} : vector<6x128xbf16>, vector<128x128xbf16>, vector<6x128xf32> -> vector<6x128xf32>
    %c0_46 = arith.constant 0 : index
    %c0_47 = arith.constant 0 : index
    %48 = vector.load %arg7[%c0_46, %c0_47] : memref<1x128xf32, #tpu.memory_space<vmem>>, vector<1x128xf32>
    %49 = vector.broadcast %48 : vector<1x128xf32> to vector<6x128xf32>
    %50 = arith.addf %47, %49 : vector<6x128xf32>
    %c0_48 = arith.constant 0 : index
    %c0_49 = arith.constant 0 : index
    %51 = vector.load %arg8[%c0_48, %c0_49] : memref<6x128xf32, #tpu.memory_space<vmem>>, vector<6x128xf32>
    %52 = arith.addf %50, %51 : vector<6x128xf32>
    %c0_50 = arith.constant 0 : index
    %c0_51 = arith.constant 0 : index
    %c0_52 = arith.constant 0 : index
    %53 = vector.load %arg9[%c0_50, %c0_51, %c0_52] : memref<1x6x128xf32, #tpu.memory_space<vmem>>, vector<1x6x128xf32>
    %54 = vector.shape_cast %53 : vector<1x6x128xf32> to vector<6x128xf32>
    %55 = vector.shape_cast %52 : vector<6x128xf32> to vector<1x6x128xf32>
    tpu.vector_store %arg9[%c0_50, %c0_51, %c0_52], %55 {strides = array<i32>} : memref<1x6x128xf32, #tpu.memory_space<vmem>>, vector<1x6x128xf32>,
    return
  }
  func.func @transform_0(%arg0: i32) -> (i32, i32, i32) {
    %c0_i32 = arith.constant 0 : i32
    %c0_i32_0 = arith.constant 0 : i32
    %c0_i32_1 = arith.constant 0 : i32
    return %arg0, %c0_i32, %c0_i32_0 : i32, i32, i32
  }
  func.func @transform_1(%arg0: i32) -> (i32, i32, i32) {
    %c0_i32 = arith.constant 0 : i32
    %c0_i32_0 = arith.constant 0 : i32
    %c0_i32_1 = arith.constant 0 : i32
    %c0_i32_2 = arith.constant 0 : i32
    return %c0_i32, %c0_i32_0, %c0_i32_1 : i32, i32, i32
  }
  func.func @transform_2(%arg0: i32) -> (i32, i32) {
    %c0_i32 = arith.constant 0 : i32
    %c0_i32_0 = arith.constant 0 : i32
    %c0_i32_1 = arith.constant 0 : i32
    return %c0_i32, %c0_i32_0 : i32, i32
  }
  func.func @transform_3(%arg0: i32) -> (i32, i32, i32) {
    %c0_i32 = arith.constant 0 : i32
    %c0_i32_0 = arith.constant 0 : i32
    %c0_i32_1 = arith.constant 0 : i32
    %c0_i32_2 = arith.constant 0 : i32
    return %c0_i32, %c0_i32_0, %c0_i32_1 : i32, i32, i32
  }
  func.func @transform_4(%arg0: i32) -> (i32, i32) {
    %c0_i32 = arith.constant 0 : i32
    %c0_i32_0 = arith.constant 0 : i32
    %c0_i32_1 = arith.constant 0 : i32
    return %c0_i32, %c0_i32_0 : i32, i32
  }
  func.func @transform_5(%arg0: i32) -> (i32, i32) {
    %c0_i32 = arith.constant 0 : i32
    %c0_i32_0 = arith.constant 0 : i32
    %c0_i32_1 = arith.constant 0 : i32
    return %c0_i32, %c0_i32_0 : i32, i32
  }
  func.func @transform_6(%arg0: i32) -> (i32, i32) {
    %c0_i32 = arith.constant 0 : i32
    %c0_i32_0 = arith.constant 0 : i32
    %c0_i32_1 = arith.constant 0 : i32
    return %c0_i32, %c0_i32_0 : i32, i32
  }
  func.func @transform_7(%arg0: i32) -> (i32, i32) {
    %c0_i32 = arith.constant 0 : i32
    %c0_i32_0 = arith.constant 0 : i32
    %c0_i32_1 = arith.constant 0 : i32
    return %c0_i32, %c0_i32_0 : i32, i32
  }
  func.func @transform_8(%arg0: i32) -> (i32, i32, i32) {
    %c0_i32 = arith.constant 0 : i32
    %c0_i32_0 = arith.constant 0 : i32
    %c0_i32_1 = arith.constant 0 : i32
    return %arg0, %c0_i32, %c0_i32_0 : i32, i32, i32
  }
}

</mosaic_0001>

<bundles_post_ra>
// kernel: conv1d_subsampling2_forward.1
= control target key start
LH: loop header
LB: loop body
LE: loop exit
PB: predicated region body
PF: predicated region fallthrough
CT: control target
= control target key end

     0   :  { %13 = vsyncpa [#allocation4], 0  ;;  %s1922_s0 = inlined_call_operand.vmem [shape: bf16[2,16,128], index: 0, kind: input, shape index: {}]   ;;  %s1923_s1 = inlined_call_operand.hbm [shape: bf16[3,128,128], index: 1, kind: input, shape index: {}]   ;;  %s1924_s2 = inlined_call_operand.vmem [shape: f32[1,128], index: 2, kind: input, shape index: {}]   ;;  %s1925_s3 = inlined_call_operand.hbm [shape: bf16[3,128,128], index: 3, kind: input, shape index: {}]   ;;  %s1926_s4 = inlined_call_operand.vmem [shape: f32[1,128], index: 4, kind: input, shape index: {}]   ;;  %s1927_s5 = inlined_call_operand.vmem [shape: bf16[128,128], index: 5, kind: input, shape index: {}]   ;;  %s1928_s6 = inlined_call_operand.vmem [shape: f32[1,128], index: 6, kind: input, shape index: {}]   ;;  %s1929_s7 = inlined_call_operand.vmem [shape: f32[6,128], index: 7, kind: input, shape index: {}]   ;;  %s1930_s8 = inlined_call_operand.vmem [shape: f32[2,6,128], index: 8, kind: output, shape index: {}]  }
   0x1   :  { %14 = vsyncpa [#allocation6], 0  ;;  %s1710_s27 = smov 0  }
   0x2 LB: > { %s1716_s28 = sadd.s32 4294967295, %s1657_s27   ;;  %p1217_p0 = scmp.ge.s32.totalorder %s1657_s27, 1  ;;  %s1657_s27 = sphi %s1710_s27, %s20_s27  }
   0x3   : > { %p224_p1 = scmp.lt.s32.totalorder %s1657_s27, 3  ;;  %s1659_s29 = smov [#allocation3]  }
   0x4   : > { %s236_s30 = sshll.u32 %s1659_s29, 4  ;;  %p1931_p3 = scmp.eq.s32.totalorder %s1716_s28, 0  ;;  %s237_s30 = int_to_ptr.vmem [resolvable:$true] %s236_s30 }
   0x5   : > { %p1720_p2 = pnand %p1217_p0, %p224_p1  ;;  %s1660_s10 = smov [#allocation5]  }
   0x6   : > { %s252_s11 = sshll.u32 %s1660_s10, 4  ;;  %s1587_s15 = scalar_lea.hbm %s1923_s1, 3072  ;;  %s1733_s11 = int_to_ptr.vmem [resolvable:$true] %s252_s11 }
   0x7   : > { %s1933_s9 = scalar_select %p1720_p2, 1, 0 }
   0x8   : > { %p1503_p4 = pneg %p1720_p2  ;;  %p1588_p6 = scmp.ne.s32.totalorder %s1923_s1, %s1587_s15 }
   0x9   : > { %p1594_p10 = scmp.lt.u32.totalorder %s1587_s15, %s1923_s1 }
   0xa   : > { %p1729_p5 = pnand %p1931_p3, %p1503_p4 }
   0xc   : > { %p1589_p7 = pneg %p1729_p5 }
   0xe   : > { %p1590_p8 = pnand %p1589_p7, %p1588_p6 }
  0x10   : > { %p1591_p9 = pneg %p1590_p8 }
  0x12   : > { %p1596_p11 = pnand %p1594_p10, %p1591_p9 }
  0x14   : > { %1599 = shalt.err (!%p1596_p11)
}
  0x15   : > { %s1600_s20 = scalar_lea.vmem %s237_s30, 3072  ;;  %p1608_p1 = scmp.lt.s32.totalorder %s237_s30, %s237_s30 }
  0x16   : > { %p1601_p12 = scmp.ne.s32.totalorder %s237_s30, %s1600_s20  ;;  %p1609_p4 = scmp.lt.s32.totalorder %s1600_s20, %s1600_s20 }
  0x18   : > { %p1603_p13 = pnand %p1601_p12, %p1589_p7  ;;  %p1610_p3 = por %p1609_p4, %p1608_p1 }
  0x1a   : > { %p1604_p0 = pneg %p1603_p13 }
  0x1c   : > { %p1611_p2 = pnand %p1610_p3, %p1604_p0 }
  0x1e   : > { %1614 = shalt.err (!%p1611_p2)
}
  0x1f   : > { %s1661_s21 = smov 64   ;;  %s1662_s22 = smov 4  }
  0x20   : > { %1506 = dma.hbm_to_vmem [thread:$0]  (!%p1729_p5), %s1923_s1, 3072, %s237_s30, [#allocation4], %s1661_s21, %s1661_s21, %s1662_s22  }
  0x21   : > { %s1615_s29 = scalar_lea.hbm %s1925_s3, 3072 }
  0x22   : > { %p1616_p6 = scmp.ne.s32.totalorder %s1925_s3, %s1615_s29  ;;  %p1622_p8 = scmp.lt.u32.totalorder %s1615_s29, %s1925_s3 }
  0x24   : > { %p1618_p2 = pnand %p1616_p6, %p1589_p7 }
  0x26   : > { %p1619_p3 = pneg %p1618_p2 }
  0x28   : > { %p1624_p9 = pnand %p1622_p8, %p1619_p3 }
  0x2a   : > { %1627 = shalt.err (!%p1624_p9)
}
  0x2b   : > { %s1628_s30 = scalar_lea.vmem %s1733_s11, 3072  ;;  %p1636_p13 = scmp.lt.s32.totalorder %s1733_s11, %s1733_s11 }
  0x2c   : > { %p1629_p10 = scmp.ne.s32.totalorder %s1733_s11, %s1628_s30  ;;  %p1637_p0 = scmp.lt.s32.totalorder %s1628_s30, %s1628_s30 }
  0x2e   : > { %p1631_p11 = pnand %p1629_p10, %p1589_p7  ;;  %p1638_p1 = por %p1637_p0, %p1636_p13 }
  0x30   : > { %p1632_p12 = pneg %p1631_p11 }
  0x32   : > { %p1639_p4 = pnand %p1638_p1, %p1632_p12 }
  0x34   : > { %1642 = shalt.err (!%p1639_p4)
}
  0x35   : > { %1509 = dma.hbm_to_vmem [thread:$0]  (!%p1729_p5), %s1925_s3, 3072, %s1733_s11, [#allocation6], %s1661_s21, %s1661_s21, %s1662_s22  }
  0x36   : > { %p1935_p6 = scmp.ne.s32.totalorder %s1933_s9, 0 }
  0x37   : > { %p1936_p2 = scmp.eq.s32.totalorder (!%p1935_p6), %s1716_s28, 0 }
  0x38   : > { %288 = sbr.rel (%p1935_p6) target bundleno = 832 (0x340), region = 52 }
  0x3f   : > { %1648 = dma.done.wait (%p1936_p2), [#allocation4], 3072   ;;  %p1937_p7 = pmov %p1936_p2 }
  0x40   : > { %p1938_p3 = pmov %p1936_p2 }
  0x41   : > { %1650 = vsyncadd (%p1937_p7), [#allocation4], 4294964224 }
  0x42   : > { %1652 = dma.done.wait (%p1938_p3), [#allocation6], 3072   ;;  %p1939_p8 = pmov %p1936_p2 }
  0x43   : > { %v1663_v0 = vmov 0.0   ;;  %vm1664_vm0 = vmmov 0   ;;  %v1528_v1 = vld [vmem:[#allocation3 + $0x40] sm:$0xff]   ;;  %v1530_v3 = vld [vmem:[#allocation3 + $0x48] sm:$0xff]   ;;  %p325_p5 = scmp.lt.s32.totalorder %s1716_s28, 1  ;;  %v1532_v5 = vld [vmem:[#allocation3 + $0x50] sm:$0xff]  }
  0x44   : > { %1654 = vsyncadd (%p1939_p8), [#allocation6], 4294964224  ;;  %1355 = vmatprep.subr.bf16.mxu0 %v1663_v0  ;;  %1375 = vmatprep.subr.bf16.mxu1 %v1663_v0  ;;  %v1529_v2 = vld [vmem:[#allocation3] sm:$0xff]   ;;  %v1531_v4 = vld [vmem:[#allocation3 + $0x8] sm:$0xff]  }
  0x45   : > { %1371 = vmatprep.mubr.msk.bf16.mxu0 %vm1664_vm0, %v1663_v0  ;;  %1391 = vmatprep.mubr.msk.bf16.mxu1 %vm1664_vm0, %v1663_v0  ;;  %s1941_s28 = smov (!%p325_p5, %s1716_s28), 1  ;;  %v1533_v6 = vld [vmem:[#allocation3 + $0x10] sm:$0xff]   ;;  %v1534_v7 = vld [vmem:[#allocation3 + $0x58] sm:$0xff]   ;;  %v1536_v9 = vld [vmem:[#allocation3 + $0x60] sm:$0xff]  }
  0x46   : > { %1356 = vmatpush3.bf16.msra.mxu0 %v1528_v1  ;;  %1376 = vmatpush3.bf16.msra.mxu1 %v1529_v2  ;;  %s1291_s9 = sshll.u32 %s1941_s28, 3  ;;  %v1535_v8 = vld [vmem:[#allocation3 + $0x18] sm:$0xff]   ;;  %v1537_v10 = vld [vmem:[#allocation3 + $0x20] sm:$0xff]   ;;  %v1538_v14 = vld [vmem:[#allocation3 + $0x68] sm:$0xff]  }
  0x47   : > { %1357 = vmatprep.subr.bf16.mxu0 %v1663_v0  ;;  %1377 = vmatprep.subr.bf16.mxu1 %v1663_v0  ;;  %s1814_s18 = scalar_lea.vmem %s1922_s0, %s1291_s9  ;;  %v1539_v15 = vld [vmem:[#allocation3 + $0x28] sm:$0xff]   ;;  %v1540_v17 = vld [vmem:[#allocation3 + $0x70] sm:$0xff]   ;;  %v1542_v19 = vld [vmem:[#allocation3 + $0x78] sm:$0xff]   ;;  %s333_s26 = scalar_lea.vmem %s1930_s8, %s1291_s9 }
  0x48   : > { %v335_v11 = vld [vmem:[%s1814_s18] sm:$0xf]  ;;  %v353_v12 = vld [vmem:[%s1814_s18 + $0x4] sm:$0xf]  ;;  %v1543_v20 = vld [vmem:[#allocation3 + $0x38] sm:$0xff]  }
  0x49   : > { %v1227_v13 = vcombine.low %v335_v11, %v353_v12  ;;  %v1541_v18 = vld [vmem:[#allocation3 + $0x30] sm:$0xff]   ;;  %v1546_v24 = vld [vmem:[#allocation3 + $0x80] sm:$0xff]   ;;  %v1547_v27 = vld [vmem:[#allocation3 + $0x88] sm:$0xff]  }
  0x4a   : > { %1358 = vmatpush3.bf16.msra.mxu0 %v1530_v3  ;;  %1378 = vmatpush3.bf16.msra.mxu1 %v1531_v4  ;;  %v336_v23 = vld [vmem:[%s1814_s18 + $0x4] sm:$0x7]  ;;  %v1549_v29 = vld [vmem:[#allocation3 + $0x98] sm:$0xff]   ;;  %v1550_v30 = vld [vmem:[#allocation3 + $0xa0] sm:$0xff]  }
  0x4b   : > { %1359 = vmatprep.subr.bf16.mxu0 %v1663_v0  ;;  %1379 = vmatprep.subr.bf16.mxu1 %v1663_v0  ;;  %v379_v16 = vshll.u32 %v1227_v13, 16  ;;  %v377_v21 = vshrl.u32 %v1227_v13, 16  ;;  %v1236_v26 = vcombine.low %v335_v11, %v336_v23  ;;  %v1548_v28 = vld [vmem:[#allocation3 + $0x90] sm:$0xff]   ;;  %v1551_v31 = vld [vmem:[#allocation3 + $0xa8] sm:$0xff]   ;;  %v1553_v35 = vld [vmem:[#allocation3 + $0xb8] sm:$0xff]  }
  0x4c   : > { %v1552_v32 = vld [vmem:[#allocation3 + $0xb0] sm:$0xff]   ;;  %v1555_v37 = vld [vmem:[#allocation5 + $0x40] sm:$0xff]   ;;  %v1557_v39 = vld [vmem:[#allocation5 + $0x48] sm:$0xff]  }
  0x4d   : > { %v381_v22 = vrot.slane %v379_v16, 1  ;;  %v566_v33 = vld [vmem:[%s1814_s18] sm:$0xe]  ;;  %v1556_v38 = vld [vmem:[#allocation5] sm:$0xff]   ;;  %v1558_v40 = vld [vmem:[#allocation5 + $0x8] sm:$0xff]  }
  0x4e   : > { %1360 = vmatpush3.bf16.msra.mxu0 %v1532_v5  ;;  %1380 = vmatpush3.bf16.msra.mxu1 %v1533_v6  ;;  %v1245_v34 = vcombine.low %v566_v33, %v353_v12  ;;  %v1559_v41 = vld [vmem:[#allocation5 + $0x50] sm:$0xff]   ;;  %v1561_v43 = vld [vmem:[#allocation5 + $0x58] sm:$0xff]   ;;  %v1563_v45 = vld [vmem:[#allocation5 + $0x60] sm:$0xff]  }
  0x4f   : > { %1361 = vmatprep.subr.bf16.mxu0 %v1663_v0  ;;  %1381 = vmatprep.subr.bf16.mxu1 %v1663_v0  ;;  %v382_v25 = vor.u32 %v381_v22, %v377_v21  ;;  %v1560_v42 = vld [vmem:[#allocation5 + $0x10] sm:$0xff]   ;;  %v1562_v44 = vld [vmem:[#allocation5 + $0x18] sm:$0xff]   ;;  %v1564_v46 = vld [vmem:[#allocation5 + $0x20] sm:$0xff]  }
  0x50   : > { %v587_v36 = vrot.slane %v1245_v34, 1  ;;  %v1565_v47 = vld [vmem:[#allocation5 + $0x68] sm:$0xff]   ;;  %v1567_v49 = vld [vmem:[#allocation5 + $0x70] sm:$0xff]   ;;  %v1569_v51 = vld [vmem:[#allocation5 + $0x78] sm:$0xff]  }
  0x51   : > { %v1566_v48 = vld [vmem:[#allocation5 + $0x28] sm:$0xff]   ;;  %v1568_v50 = vld [vmem:[#allocation5 + $0x30] sm:$0xff]   ;;  %v1570_v52 = vld [vmem:[#allocation5 + $0x38] sm:$0xff]  }
  0x52   : > { %1362 = vmatpush3.bf16.msra.mxu0 %v1534_v7  ;;  %1382 = vmatpush3.bf16.msra.mxu1 %v1535_v8  ;;  %v1254_v1 = vld [vmem:[%s1924_s2] ss:$0 sm:$0xff]  ;;  %v1571_v11 = vld [vmem:[#allocation5 + $0x80] sm:$0xff]   ;;  %v1572_v16 = vld [vmem:[#allocation5 + $0x88] sm:$0xff]  }
  0x53   : > { %1363 = vmatprep.subr.bf16.mxu0 %v1663_v0  ;;  %1383 = vmatprep.subr.bf16.mxu1 %v1663_v0  ;;  %v1577_v21 = vld [vmem:[#allocation5 + $0xb0] sm:$0xff]   ;;  %v1578_v22 = vld [vmem:[#allocation5 + $0xb8] sm:$0xff]  }
  0x56   : > { %1364 = vmatpush3.bf16.msra.mxu0 %v1536_v9  ;;  %1384 = vmatpush3.bf16.msra.mxu1 %v1537_v10 }
  0x57   : > { %1365 = vmatprep.subr.bf16.mxu0 %v1663_v0  ;;  %1385 = vmatprep.subr.bf16.mxu1 %v1663_v0 }
  0x5a   : > { %1366 = vmatpush3.bf16.msra.mxu0 %v1538_v14  ;;  %1386 = vmatpush3.bf16.msra.mxu1 %v1539_v15 }
  0x5b   : > { %1367 = vmatprep.subr.bf16.mxu0 %v1663_v0  ;;  %1387 = vmatprep.subr.bf16.mxu1 %v1663_v0 }
  0x5e   : > { %1368 = vmatpush3.bf16.msra.mxu0 %v1540_v17  ;;  %1388 = vmatpush3.bf16.msra.mxu1 %v1541_v18  ;;  %v1573_v17 = vld [vmem:[#allocation5 + $0x90] sm:$0xff]   ;;  %v1574_v18 = vld [vmem:[#allocation5 + $0x98] sm:$0xff]  }
  0x5f   : > { %1369 = vmatprep.subr.bf16.mxu0 %v1663_v0  ;;  %1389 = vmatprep.subr.bf16.mxu1 %v1663_v0 }
  0x62   : > { %1370 = vmatpush3.bf16.msra.mxu0 %v1542_v19  ;;  %1390 = vmatpush3.bf16.msra.mxu1 %v1543_v20  ;;  %v1575_v19 = vld [vmem:[#allocation5 + $0xa0] sm:$0xff]   ;;  %v1576_v20 = vld [vmem:[#allocation5 + $0xa8] sm:$0xff]  }
  0x63   : > { %1395 = vmatprep.subr.bf16.mxu0 %v1663_v0  ;;  %1415 = vmatprep.subr.bf16.mxu1 %v1663_v0 }
  0x65   : > { %1372 = vmatmul.mubr.bf16.vlgmr.msra.gmra.mrb[0].mxu0 %v382_v25  ;;  %1392 = vmatmul.mubr.bf16.vlgmr.msra.gmra.mrb[0].mxu1 %v1236_v26  ;;  %v1579_v25 = vld [vmem:[%s1927_s5] sm:$0xff]   ;;  %v1580_v26 = vld [vmem:[%s1927_s5 + $0x8] sm:$0xff]  }
  0x66   : > { %1396 = vmatpush3.bf16.msra.mxu0 %v1546_v24  ;;  %1411 = vmatprep.mubr.msk.bf16.mxu0 %vm1664_vm0, %v1663_v0 }
  0x67   : > { %1397 = vmatprep.subr.bf16.mxu0 %v1663_v0  ;;  %1431 = vmatprep.mubr.msk.bf16.mxu1 %vm1664_vm0, %v1663_v0 }
  0x68   : > { %1416 = vmatpush3.bf16.msra.mxu1 %v1555_v37 }
  0x69   : > { %1417 = vmatprep.subr.bf16.mxu1 %v1663_v0 }
  0x6a   : > { %1398 = vmatpush3.bf16.msra.mxu0 %v1547_v27  ;;  %v1581_v27 = vld [vmem:[%s1927_s5 + $0x10] sm:$0xff]  }
  0x6b   : > { %1399 = vmatprep.subr.bf16.mxu0 %v1663_v0 }
  0x6c   : > { %1418 = vmatpush3.bf16.msra.mxu1 %v1557_v39 }
  0x6d   : > { %1419 = vmatprep.subr.bf16.mxu1 %v1663_v0 }
  0x6e   : > { %1400 = vmatpush3.bf16.msra.mxu0 %v1548_v28  ;;  %v1582_v28 = vld [vmem:[%s1927_s5 + $0x18] sm:$0xff]  }
  0x6f   : > { %1401 = vmatprep.subr.bf16.mxu0 %v1663_v0 }
  0x70   : > { %1420 = vmatpush3.bf16.msra.mxu1 %v1559_v41 }
  0x71   : > { %1421 = vmatprep.subr.bf16.mxu1 %v1663_v0 }
  0x72   : > { %1402 = vmatpush3.bf16.msra.mxu0 %v1549_v29  ;;  %v1583_v29 = vld [vmem:[%s1927_s5 + $0x20] sm:$0xff]  }
  0x73   : > { %1403 = vmatprep.subr.bf16.mxu0 %v1663_v0 }
  0x74   : > { %1422 = vmatpush3.bf16.msra.mxu1 %v1561_v43 }
  0x75   : > { %1423 = vmatprep.subr.bf16.mxu1 %v1663_v0 }
  0x76   : > { %1404 = vmatpush3.bf16.msra.mxu0 %v1550_v30  ;;  %v1584_v30 = vld [vmem:[%s1927_s5 + $0x28] sm:$0xff]  }
  0x77   : > { %1405 = vmatprep.subr.bf16.mxu0 %v1663_v0 }
  0x78   : > { %1424 = vmatpush3.bf16.msra.mxu1 %v1563_v45 }
  0x79   : > { %1425 = vmatprep.subr.bf16.mxu1 %v1663_v0 }
  0x7a   : > { %1406 = vmatpush3.bf16.msra.mxu0 %v1551_v31  ;;  %v1585_v31 = vld [vmem:[%s1927_s5 + $0x30] sm:$0xff]  }
  0x7b   : > { %1407 = vmatprep.subr.bf16.mxu0 %v1663_v0 }
  0x7c   : > { %1426 = vmatpush3.bf16.msra.mxu1 %v1565_v47 }
  0x7d   : > { %1427 = vmatprep.subr.bf16.mxu1 %v1663_v0 }
  0x7e   : > { %1408 = vmatpush3.bf16.msra.mxu0 %v1552_v32  ;;  %v1586_v32 = vld [vmem:[%s1927_s5 + $0x38] sm:$0xff]  }
  0x7f   : > { %1409 = vmatprep.subr.bf16.mxu0 %v1663_v0 }
  0x80   : > { %1428 = vmatpush3.bf16.msra.mxu1 %v1567_v49 }
  0x81   : > { %1429 = vmatprep.subr.bf16.mxu1 %v1663_v0 }
  0x82   : > { %1410 = vmatpush3.bf16.msra.mxu0 %v1553_v35 }
  0x83   : > { %1435 = vmatprep.subr.bf16.mxu0 %v1663_v0 }
  0x84   : > { %1430 = vmatpush3.bf16.msra.mxu1 %v1569_v51 }
  0x85   : > { %1412 = vmatmul.mubr.bf16.vlgmr.msra.gmra.mrb[4].mxu0 %v587_v36  ;;  %1455 = vmatprep.subr.bf16.mxu1 %v1663_v0 }
  0x86   : > { %1451 = vmatprep.mubr.msk.bf16.mxu0 %vm1664_vm0, %v1663_v0  ;;  %1436 = vmatpush3.bf16.msra.mxu0 %v1556_v38 }
  0x87   : > { %1437 = vmatprep.subr.bf16.mxu0 %v1663_v0 }
  0x8a   : > { %1438 = vmatpush3.bf16.msra.mxu0 %v1558_v40 }
  0x8b   : > { %1439 = vmatprep.subr.bf16.mxu0 %v1663_v0 }
  0x8e   : > { %1440 = vmatpush3.bf16.msra.mxu0 %v1560_v42 }
  0x8f   : > { %1441 = vmatprep.subr.bf16.mxu0 %v1663_v0 }
  0x92   : > { %1442 = vmatpush3.bf16.msra.mxu0 %v1562_v44 }
  0x93   : > { %1443 = vmatprep.subr.bf16.mxu0 %v1663_v0 }
  0x96   : > { %1444 = vmatpush3.bf16.msra.mxu0 %v1564_v46 }
  0x97   : > { %1445 = vmatprep.subr.bf16.mxu0 %v1663_v0 }
  0x9a   : > { %1446 = vmatpush3.bf16.msra.mxu0 %v1566_v48 }
  0x9b   : > { %1447 = vmatprep.subr.bf16.mxu0 %v1663_v0 }
  0x9e   : > { %1448 = vmatpush3.bf16.msra.mxu0 %v1568_v50  ;;  %v1280_v50 = vld [vmem:[%s1928_s6] ss:$0 sm:$0xff] }
  0x9f   : > { %1449 = vmatprep.subr.bf16.mxu0 %v1663_v0 }
  0xa2   : > { %1450 = vmatpush3.bf16.msra.mxu0 %v1570_v52  ;;  %v1137_v52 = vld [vmem:[%s1929_s7] sm:$0x3f] }
  0xa3   : > { %1475 = vmatprep.subr.bf16.mxu0 %v1663_v0 }
 0x138   : > { %v466_v53 = vpop.f32.mrb[0].mxu0  ;;  %v559_v54 = vpop.f32.mrb[0].mxu1 }
 0x139   : > { %v1373_v55 = vpop.f32.mrb[1].mxu0  ;;  %v560_v56 = vadd.f32 %v559_v54, %v466_v53  ;;  %v1393_v57 = vpop.f32.mrb[1].mxu1 }
 0x13a   : > { %v469_v58 = vpop.f32.mrb[2].mxu0  ;;  %v562_v59 = vpop.f32.mrb[2].mxu1 }
 0x13b   : > { %v1374_v60 = vpop.f32.mrb[3].mxu0  ;;  %v563_v61 = vadd.f32 %v562_v59, %v469_v58  ;;  %v1394_v62 = vpop.f32.mrb[3].mxu1 }
 0x158   : > { %v671_v63 = vpop.f32.mrb[4].mxu0 }
 0x159   : > { %v678_v2 = vadd.f32 %v671_v63, %v560_v56  ;;  %v1413_v3 = vpop.f32.mrb[5].mxu0 }
 0x15a   : > { %v674_v4 = vpop.f32.mrb[6].mxu0 }
 0x15b   : > { %v687_v5 = vadd.f32 %v1254_v1, %v678_v2  ;;  %v679_v6 = vadd.f32 %v674_v4, %v563_v61  ;;  %v1414_v7 = vpop.f32.mrb[7].mxu0 }
 0x15d   : > { %v689_v8 = vmax.f32 %v687_v5, 0.0  ;;  %v688_v9 = vadd.f32 %v1254_v1, %v679_v6 }
 0x15f   : > { %691 = vst [vmem:[#allocation2] sm:$0xff] %v689_v8  ;;  %v690_v10 = vmax.f32 %v688_v9, 0.0 }
 0x161   : > { %692 = vst [vmem:[#allocation2 + $0x8] sm:$0x3f] %v690_v10 }
 0x168   : > { %v696_v12 = vld [vmem:[#allocation2 + $0x1] ss:$2 sm:$0x3f]  ;;  %v693_v13 = vld [vmem:[#allocation2] ss:$2 sm:$0x3f] }
 0x169   : > { %v697_v14 = vpack.c.bf16 %v696_v12, %v696_v12  ;;  %v694_v15 = vpack.c.bf16 %v693_v13, %v693_v13  ;;  %v699_v23 = vld [vmem:[#allocation2 + $0x2] ss:$2 sm:$0x3f] }
 0x16a   : > { %v700_v24 = vpack.c.bf16 %v699_v23, %v699_v23 }
 0x16b   : > { %1432 = vmatmul.mubr.bf16.vlgmr.msra.gmra.mrb[4].mxu1 %v697_v14  ;;  %1452 = vmatmul.mubr.bf16.vlgmr.msra.gmra.mrb[8].mxu0 %v694_v15 }
 0x16c   : > { %1456 = vmatpush3.bf16.msra.mxu1 %v1571_v11  ;;  %1471 = vmatprep.mubr.msk.bf16.mxu1 %vm1664_vm0, %v1663_v0 }
 0x16d   : > { %1457 = vmatprep.subr.bf16.mxu1 %v1663_v0  ;;  %1491 = vmatprep.mubr.msk.bf16.mxu0 %vm1664_vm0, %v1663_v0 }
 0x16e   : > { %1476 = vmatpush3.bf16.msra.mxu0 %v1579_v25 }
 0x16f   : > { %1477 = vmatprep.subr.bf16.mxu0 %v1663_v0 }
 0x170   : > { %1458 = vmatpush3.bf16.msra.mxu1 %v1572_v16 }
 0x171   : > { %1459 = vmatprep.subr.bf16.mxu1 %v1663_v0 }
 0x172   : > { %1478 = vmatpush3.bf16.msra.mxu0 %v1580_v26 }
 0x173   : > { %1479 = vmatprep.subr.bf16.mxu0 %v1663_v0 }
 0x174   : > { %1460 = vmatpush3.bf16.msra.mxu1 %v1573_v17 }
 0x175   : > { %1461 = vmatprep.subr.bf16.mxu1 %v1663_v0 }
 0x176   : > { %1480 = vmatpush3.bf16.msra.mxu0 %v1581_v27 }
 0x177   : > { %1481 = vmatprep.subr.bf16.mxu0 %v1663_v0 }
 0x178   : > { %1462 = vmatpush3.bf16.msra.mxu1 %v1574_v18 }
 0x179   : > { %1463 = vmatprep.subr.bf16.mxu1 %v1663_v0 }
 0x17a   : > { %1482 = vmatpush3.bf16.msra.mxu0 %v1582_v28 }
 0x17b   : > { %1483 = vmatprep.subr.bf16.mxu0 %v1663_v0 }
 0x17c   : > { %1464 = vmatpush3.bf16.msra.mxu1 %v1575_v19 }
 0x17d   : > { %1465 = vmatprep.subr.bf16.mxu1 %v1663_v0 }
 0x17e   : > { %1484 = vmatpush3.bf16.msra.mxu0 %v1583_v29 }
 0x17f   : > { %1485 = vmatprep.subr.bf16.mxu0 %v1663_v0 }
 0x180   : > { %1466 = vmatpush3.bf16.msra.mxu1 %v1576_v20 }
 0x181   : > { %1467 = vmatprep.subr.bf16.mxu1 %v1663_v0 }
 0x182   : > { %1486 = vmatpush3.bf16.msra.mxu0 %v1584_v30 }
 0x183   : > { %1487 = vmatprep.subr.bf16.mxu0 %v1663_v0 }
 0x184   : > { %1468 = vmatpush3.bf16.msra.mxu1 %v1577_v21 }
 0x185   : > { %1469 = vmatprep.subr.bf16.mxu1 %v1663_v0 }
 0x186   : > { %1488 = vmatpush3.bf16.msra.mxu0 %v1585_v31 }
 0x187   : > { %1489 = vmatprep.subr.bf16.mxu0 %v1663_v0  ;;  %v1279_v0 = vld [vmem:[%s1926_s4] ss:$0 sm:$0xff] }
 0x188   : > { %1470 = vmatpush3.bf16.msra.mxu1 %v1578_v22 }
 0x18a   : > { %1490 = vmatpush3.bf16.msra.mxu0 %v1586_v32 }
 0x18b   : > { %1472 = vmatmul.mubr.bf16.vlgmr.msra.gmra.mrb[8].mxu1 %v700_v24 }
 0x23e   : > { %v816_v33 = vpop.f32.mrb[4].mxu1  ;;  %v904_v34 = vpop.f32.mrb[8].mxu0 }
 0x23f   : > { %v905_v35 = vadd.f32 %v904_v34, %v816_v33  ;;  %v1433_v36 = vpop.f32.mrb[5].mxu1  ;;  %v1453_v37 = vpop.f32.mrb[9].mxu0 }
 0x240   : > { %v819_v38 = vpop.f32.mrb[6].mxu1  ;;  %v907_v39 = vpop.f32.mrb[10].mxu0 }
 0x241   : > { %v1434_v40 = vpop.f32.mrb[7].mxu1  ;;  %v1454_v41 = vpop.f32.mrb[11].mxu0 }
 0x25e   : > { %v1009_v42 = vpop.f32.mrb[8].mxu1 }
 0x25f   : > { %v1015_v43 = vadd.f32 %v1009_v42, %v905_v35  ;;  %v1473_v44 = vpop.f32.mrb[9].mxu1 }
 0x260   : > { %v1012_v45 = vpop.f32.mrb[10].mxu1 }
 0x261   : > { %v1023_v46 = vadd.f32 %v1279_v0, %v1015_v43  ;;  %v1474_v47 = vpop.f32.mrb[11].mxu1 }
 0x263   : > { %v1024_v48 = vmax.f32 %v1023_v46, 0.0 }
 0x265   : > { %v1025_v49 = vpack.c.bf16 %v1024_v48, %v1024_v48 }
 0x267   : > { %1492 = vmatmul.mubr.bf16.vlgmr.msra.gmra.mrb[12].mxu0 %v1025_v49 }
 0x33a   : > { %v1131_v51 = vpop.f32.mrb[12].mxu0 }
 0x33b   : > { %v1132_v53 = vadd.f32 %v1280_v50, %v1131_v51  ;;  %v1493_v54 = vpop.f32.mrb[13].mxu0 }
 0x33c   : > { %v1134_v55 = vpop.f32.mrb[14].mxu0 }
 0x33d   : > { %v1138_v56 = vadd.f32 %v1137_v52, %v1132_v53  ;;  %v1494_v57 = vpop.f32.mrb[15].mxu0 }
 0x33f   : > { %1139 = vst [vmem:[%s333_s26] sm:$0x3f] %v1138_v56 }
 0x340 PF: > { %s20_s27 = sadd.s32 1, %s1657_s27  }
 0x341   : > { %p17_p9 = scmp.ge.s32.totalorder %s20_s27, 4  }
 0x343   :  { %19 = sbr.rel (!%p17_p9) target bundleno = 2 (0x2), region = 97 }
 0x34a   :  { %1159 = vsyncpa [#allocation4], 1 }
 0x34b   :  { %1161 = vsyncpa [#allocation4 + $0x1], 1 }
 0x34c   :  { %1162 = vsyncpa [#allocation6], 1 }

</bundles_post_ra>
